<compile_context>
chip_gen: v5e
topology: v5e:2x2
jax: 0.10.0
libtpu: 0.0.40
codegen_flags: <defaults>
</compile_context>

<pallas_src>
import jax
import jax.numpy as jnp
from jax.experimental import pallas as pl
from jax.experimental.pallas import tpu as pltpu

NEG_LARGE = -1e30   # bias value for padded logit columns -> exp underflows to exact 0
PAD = 128           # lane-dense padded width for all hidden / output dims
TB_MAX = 512        # max batch-tile rows (sized so 2x x-tile + out-tile + weights << 32 MiB)


def mlp_kernel(x_ref, w1_ref, ws_ref, b_ref, o_ref):
    # x_ref : (TB, IN)      f32  -> cast to bf16 here, right before the MXU
    # w1_ref: (IN, 128)     bf16
    # ws_ref: (3, 128, 128) bf16  (fc2 / fc3 / fc4 weights, zero-padded lane-dense)
    # b_ref : (4, 128)      f32   (packed biases; fc4 pad columns = -1e30)
    # o_ref : (TB, 128)     f32   softmax probabilities (padded columns ~ 0)
    b = b_ref[...]

    # fc1 + ReLU   (dropout1 == identity at inference)
    h = jnp.dot(x_ref[...].astype(jnp.bfloat16), w1_ref[...],
                preferred_element_type=jnp.float32)
    h = jnp.maximum(h + b[0:1, :], 0.0)                                   # (TB, 128)

    # fc2 + ReLU   (dropout2 == identity; columns 64..127 are zero-weight + zero-bias)
    h = jnp.dot(h.astype(jnp.bfloat16), ws_ref[0],
                preferred_element_type=jnp.float32)
    h = jnp.maximum(h + b[1:2, :], 0.0)                                   # (TB, 128)

    # fc3 + ReLU
    h = jnp.dot(h.astype(jnp.bfloat16), ws_ref[1],
                preferred_element_type=jnp.float32)
    h = jnp.maximum(h + b[2:3, :], 0.0)                                   # (TB, 128)

    # fc4 logits; padded columns carry a -1e30 bias so they vanish in softmax
    logits = jnp.dot(h.astype(jnp.bfloat16), ws_ref[2],
                     preferred_element_type=jnp.float32) + b[3:4, :]      # (TB, 128)

    # numerically stable softmax; EUP approx reciprocal + one Newton step -> rows sum ~1
    m = jnp.max(logits, axis=-1, keepdims=True)
    e = jnp.exp(logits - m)
    s = jnp.sum(e, axis=-1, keepdims=True)
    inv = pl.reciprocal(s, approx=True)
    inv = inv * (2.0 - s * inv)          # Newton refinement (VPU, cheap)
    o_ref[...] = e * inv


def _round_up(n, m):
    return ((n + m - 1) // m) * m


def simple_linear_network(x, packed):
    """x: (B, C, H, W) or (B, features). Returns softmax probs (B, output_size)."""
    w1, w_slab, biases, out_size = packed
    B = x.shape[0]
    in_size = w1.shape[0]
    x2d = x.reshape(B, -1).astype(jnp.float32)   # x.view(B,-1).float(); bf16 cast is in-kernel

    # batch tiling: tile rows, keep weights/biases VMEM-resident across grid steps
    tb = min(TB_MAX, _round_up(B, 8))
    padded_b = _round_up(B, tb)
    if padded_b != B:
        x2d = jnp.pad(x2d, ((0, padded_b - B), (0, 0)))
    grid = (padded_b // tb,)

    flops = 2 * padded_b * (in_size * PAD + 3 * PAD * PAD)
    bytes_accessed = int(x2d.nbytes + w1.nbytes + w_slab.nbytes + biases.nbytes
                         + padded_b * PAD * 4)

    out_padded = pl.pallas_call(
        mlp_kernel,
        out_shape=jax.ShapeDtypeStruct((padded_b, PAD), jnp.float32),
        grid=grid,
        in_specs=[
            pl.BlockSpec((tb, in_size), lambda i: (i, 0)),       # x tile: pipelined per step
            pl.BlockSpec((in_size, PAD), lambda i: (0, 0)),      # w1: VMEM-resident
            pl.BlockSpec((3, PAD, PAD), lambda i: (0, 0, 0)),    # fc2/3/4 slab: resident
            pl.BlockSpec((4, PAD), lambda i: (0, 0)),            # bias slab: resident
        ],
        out_specs=pl.BlockSpec((tb, PAD), lambda i: (i, 0)),
        compiler_params=pltpu.CompilerParams(
            dimension_semantics=("parallel",),        # v7x: both TensorCores share the batch
            vmem_limit_bytes=32 * 1024 * 1024),       # explicit; safe on v5e/v6e/v7x
        cost_estimate=pl.CostEstimate(flops=flops,
                                      transcendentals=padded_b * PAD,
                                      bytes_accessed=bytes_accessed),
    )(x2d, w1, w_slab, biases)
    return out_padded[:B, :out_size]


def init_params(key, input_size, output_size):
    """PyTorch-Linear-style init (U(-1/sqrt(fin), 1/sqrt(fin))), packed for the kernel:
    w1 (in,128) bf16; fc2/fc3/fc4 zero-padded to 128x128 and stacked into a (3,128,128)
    bf16 slab; all four biases packed into one (4,128) f32 slab (fc4 pad cols = -1e30)."""
    assert output_size <= PAD, "kernel packs fc4 output into 128 lanes"
    dims = [(input_size, 128), (128, 64), (64, 32), (32, output_size)]
    ws, bs = [], []
    for i, (fin, fout) in enumerate(dims):
        kw, kb, key = jax.random.split(jax.random.fold_in(key, i), 3)
        bound = 1.0 / (fin ** 0.5)
        ws.append(jax.random.uniform(kw, (fin, fout), jnp.float32, -bound, bound))
        bs.append(jax.random.uniform(kb, (fout,), jnp.float32, -bound, bound))

    w1 = ws[0].astype(jnp.bfloat16)                              # (input_size, 128)

    slab = jnp.zeros((3, PAD, PAD), jnp.float32)
    slab = slab.at[0, :128, :64].set(ws[1])                      # fc2
    slab = slab.at[1, :64, :32].set(ws[2])                       # fc3
    slab = slab.at[2, :32, :output_size].set(ws[3])              # fc4
    w_slab = slab.astype(jnp.bfloat16)

    biases = jnp.zeros((4, PAD), jnp.float32)
    biases = biases.at[0, :128].set(bs[0])
    biases = biases.at[1, :64].set(bs[1])
    biases = biases.at[2, :32].set(bs[2])
    biases = biases.at[3, :].set(NEG_LARGE)
    biases = biases.at[3, :output_size].set(bs[3])

    # TODO(synk): optional int8 w1 path for v5e/v6e (not portable to v7x's fp8-only MXU).
    return (w1, w_slab, biases, output_size)


def reference_forward(x, packed):
    """Pure-JAX f32 reference with the same (bf16-stored) weights."""
    w1, w_slab, biases, out_size = packed
    B = x.shape[0]
    h = x.reshape(B, -1).astype(jnp.float32)
    h = jax.nn.relu(h @ w1.astype(jnp.float32) + biases[0])
    h = jax.nn.relu(h @ w_slab[0].astype(jnp.float32) + biases[1])       # pads are zero
    h = jax.nn.relu(h @ w_slab[1].astype(jnp.float32) + biases[2])
    logits = (h @ w_slab[2].astype(jnp.float32))[:, :out_size] + biases[3, :out_size]
    return jax.nn.softmax(logits, axis=-1)


if __name__ == "__main__":
    key = jax.random.PRNGKey(0)
    kx, kp = jax.random.split(key)

    B, C, H, W = 2, 4, 16, 16
    input_size = C * H * W          # 1024 after flatten
    output_size = 10

    x = jax.random.normal(kx, (B, C, H, W), dtype=jnp.float32)
    params = init_params(kp, input_size, output_size)

    out = simple_linear_network(x, params)
    jax.block_until_ready(out)

    # sanity: shape, softmax rows sum to ~1, matches f32 reference to bf16 precision
    assert out.shape == (B, output_size)
    assert bool(jnp.all(jnp.abs(jnp.sum(out, axis=-1) - 1.0) < 1e-3))
    ref = reference_forward(x, params)
    assert bool(jnp.all(jnp.abs(out - ref) < 2e-2))

    print("KERNEL_OK")
</pallas_src>

<mosaic_0001>
module attributes {stable_mosaic.version = 11 : i64} {
  func.func @mlp_kernel(%arg0: i32, %arg1: memref<8x1024xf32, #tpu.memory_space<vmem>>, %arg2: memref<1024x128xbf16, #tpu.memory_space<vmem>>, %arg3: memref<3x128x128xbf16, #tpu.memory_space<vmem>>, %arg4: memref<4x128xf32, #tpu.memory_space<vmem>>, %arg5: memref<8x128xf32, #tpu.memory_space<vmem>>) attributes {dimension_semantics = [#tpu.dimension_semantics<parallel>], iteration_bounds = array<i64: 1>, scalar_prefetch = 0 : i64, scratch_operands = 0 : i64, tpu.core_type = #tpu.core_type<tc>, window_params = [{transform_indices = @transform_0, window_bounds = array<i64: 8, 1024>}, {pipeline_mode = #tpu.pipeline_mode<synchronous>, transform_indices = @transform_1, window_bounds = array<i64: 1024, 128>}, {pipeline_mode = #tpu.pipeline_mode<synchronous>, transform_indices = @transform_2, window_bounds = array<i64: 3, 128, 128>}, {pipeline_mode = #tpu.pipeline_mode<synchronous>, transform_indices = @transform_3, window_bounds = array<i64: 4, 128>}, {transform_indices = @transform_4, window_bounds = array<i64: 8, 128>}]} {
    %c0 = arith.constant 0 : index
    %c0_0 = arith.constant 0 : index
    %0 = vector.load %arg4[%c0, %c0_0] : memref<4x128xf32, #tpu.memory_space<vmem>>, vector<4x128xf32>
    %c0_1 = arith.constant 0 : index
    %c0_2 = arith.constant 0 : index
    %1 = vector.load %arg1[%c0_1, %c0_2] : memref<8x1024xf32, #tpu.memory_space<vmem>>, vector<8x1024xf32>
    %2 = arith.truncf %1 : vector<8x1024xf32> to vector<8x1024xbf16>
    %c0_3 = arith.constant 0 : index
    %c0_4 = arith.constant 0 : index
    %3 = vector.load %arg2[%c0_3, %c0_4] : memref<1024x128xbf16, #tpu.memory_space<vmem>>, vector<1024x128xbf16>
    %cst = arith.constant dense<0.000000e+00> : vector<8x128xf32>
    %4 = tpu.matmul %2, %3, %cst {dimension_numbers = #tpu.dot_dimension_numbers<[1], [0], [0], [1], [0, 0, 1, 1], [], []>} : vector<8x1024xbf16>, vector<1024x128xbf16>, vector<8x128xf32> -> vector<8x128xf32>
    %5 = vector.extract_strided_slice %0 {offsets = [0, 0], sizes = [1, 128], strides = [1, 1]} : vector<4x128xf32> to vector<1x128xf32>
    %6 = vector.broadcast %5 : vector<1x128xf32> to vector<8x128xf32>
    %7 = arith.addf %4, %6 : vector<8x128xf32>
    %cst_5 = arith.constant 0.000000e+00 : f32
    %8 = vector.broadcast %cst_5 : f32 to vector<8x128xf32>
    %9 = arith.maximumf %7, %8 : vector<8x128xf32>
    %10 = arith.truncf %9 : vector<8x128xf32> to vector<8x128xbf16>
    %c0_6 = arith.constant 0 : index
    %c0_7 = arith.constant 0 : index
    %c0_8 = arith.constant 0 : index
    %11 = vector.load %arg3[%c0_6, %c0_7, %c0_8] : memref<3x128x128xbf16, #tpu.memory_space<vmem>>, vector<1x128x128xbf16>
    %12 = vector.shape_cast %11 : vector<1x128x128xbf16> to vector<128x128xbf16>
    %cst_9 = arith.constant dense<0.000000e+00> : vector<8x128xf32>
    %13 = tpu.matmul %10, %12, %cst_9 {dimension_numbers = #tpu.dot_dimension_numbers<[1], [0], [0], [1], [0, 0, 1, 1], [], []>} : vector<8x128xbf16>, vector<128x128xbf16>, vector<8x128xf32> -> vector<8x128xf32>
    %14 = vector.extract_strided_slice %0 {offsets = [1, 0], sizes = [1, 128], strides = [1, 1]} : vector<4x128xf32> to vector<1x128xf32>
    %15 = vector.broadcast %14 : vector<1x128xf32> to vector<8x128xf32>
    %16 = arith.addf %13, %15 : vector<8x128xf32>
    %cst_10 = arith.constant 0.000000e+00 : f32
    %17 = vector.broadcast %cst_10 : f32 to vector<8x128xf32>
    %18 = arith.maximumf %16, %17 : vector<8x128xf32>
    %19 = arith.truncf %18 : vector<8x128xf32> to vector<8x128xbf16>
    %c1 = arith.constant 1 : index
    %c0_11 = arith.constant 0 : index
    %c0_12 = arith.constant 0 : index
    %20 = vector.load %arg3[%c1, %c0_11, %c0_12] : memref<3x128x128xbf16, #tpu.memory_space<vmem>>, vector<1x128x128xbf16>
    %21 = vector.shape_cast %20 : vector<1x128x128xbf16> to vector<128x128xbf16>
    %cst_13 = arith.constant dense<0.000000e+00> : vector<8x128xf32>
    %22 = tpu.matmul %19, %21, %cst_13 {dimension_numbers = #tpu.dot_dimension_numbers<[1], [0], [0], [1], [0, 0, 1, 1], [], []>} : vector<8x128xbf16>, vector<128x128xbf16>, vector<8x128xf32> -> vector<8x128xf32>
    %23 = vector.extract_strided_slice %0 {offsets = [2, 0], sizes = [1, 128], strides = [1, 1]} : vector<4x128xf32> to vector<1x128xf32>
    %24 = vector.broadcast %23 : vector<1x128xf32> to vector<8x128xf32>
    %25 = arith.addf %22, %24 : vector<8x128xf32>
    %cst_14 = arith.constant 0.000000e+00 : f32
    %26 = vector.broadcast %cst_14 : f32 to vector<8x128xf32>
    %27 = arith.maximumf %25, %26 : vector<8x128xf32>
    %28 = arith.truncf %27 : vector<8x128xf32> to vector<8x128xbf16>
    %c2 = arith.constant 2 : index
    %c0_15 = arith.constant 0 : index
    %c0_16 = arith.constant 0 : index
    %29 = vector.load %arg3[%c2, %c0_15, %c0_16] : memref<3x128x128xbf16, #tpu.memory_space<vmem>>, vector<1x128x128xbf16>
    %30 = vector.shape_cast %29 : vector<1x128x128xbf16> to vector<128x128xbf16>
    %cst_17 = arith.constant dense<0.000000e+00> : vector<8x128xf32>
    %31 = tpu.matmul %28, %30, %cst_17 {dimension_numbers = #tpu.dot_dimension_numbers<[1], [0], [0], [1], [0, 0, 1, 1], [], []>} : vector<8x128xbf16>, vector<128x128xbf16>, vector<8x128xf32> -> vector<8x128xf32>
    %32 = vector.extract_strided_slice %0 {offsets = [3, 0], sizes = [1, 128], strides = [1, 1]} : vector<4x128xf32> to vector<1x128xf32>
    %33 = vector.broadcast %32 : vector<1x128xf32> to vector<8x128xf32>
    %34 = arith.addf %31, %33 : vector<8x128xf32>
    %cst_18 = arith.constant dense<0xFF800000> : vector<8xf32>
    %35 = vector.multi_reduction <maximumf>, %34, %cst_18 [1] : vector<8x128xf32> to vector<8xf32>
    %36 = vector.shape_cast %35 : vector<8xf32> to vector<8x1xf32>
    %37 = vector.broadcast %36 : vector<8x1xf32> to vector<8x128xf32>
    %38 = arith.subf %34, %37 : vector<8x128xf32>
    %39 = math.exp %38 : vector<8x128xf32>
    %cst_19 = arith.constant dense<0.000000e+00> : vector<8xf32>
    %40 = vector.multi_reduction <add>, %39, %cst_19 [1] : vector<8x128xf32> to vector<8xf32>
    %41 = vector.shape_cast %40 : vector<8xf32> to vector<8x1xf32>
    %42 = tpu.reciprocal %41 {approx = true} : vector<8x1xf32> -> vector<8x1xf32>
    %43 = arith.mulf %41, %42 : vector<8x1xf32>
    %cst_20 = arith.constant 2.000000e+00 : f32
    %44 = vector.broadcast %cst_20 : f32 to vector<8x1xf32>
    %45 = arith.subf %44, %43 : vector<8x1xf32>
    %46 = arith.mulf %42, %45 : vector<8x1xf32>
    %47 = vector.broadcast %46 : vector<8x1xf32> to vector<8x128xf32>
    %48 = arith.mulf %39, %47 : vector<8x128xf32>
    %c0_21 = arith.constant 0 : index
    %c0_22 = arith.constant 0 : index
    %49 = vector.load %arg5[%c0_21, %c0_22] : memref<8x128xf32, #tpu.memory_space<vmem>>, vector<8x128xf32>
    tpu.vector_store %arg5[%c0_21, %c0_22], %48 {strides = array<i32>} : memref<8x128xf32, #tpu.memory_space<vmem>>, vector<8x128xf32>,
    return
  }
  func.func @transform_0(%arg0: i32) -> (i32, i32) {
    %c0_i32 = arith.constant 0 : i32
    %c0_i32_0 = arith.constant 0 : i32
    return %arg0, %c0_i32 : i32, i32
  }
  func.func @transform_1(%arg0: i32) -> (i32, i32) {
    %c0_i32 = arith.constant 0 : i32
    %c0_i32_0 = arith.constant 0 : i32
    %c0_i32_1 = arith.constant 0 : i32
    return %c0_i32, %c0_i32_0 : i32, i32
  }
  func.func @transform_2(%arg0: i32) -> (i32, i32, i32) {
    %c0_i32 = arith.constant 0 : i32
    %c0_i32_0 = arith.constant 0 : i32
    %c0_i32_1 = arith.constant 0 : i32
    %c0_i32_2 = arith.constant 0 : i32
    return %c0_i32, %c0_i32_0, %c0_i32_1 : i32, i32, i32
  }
  func.func @transform_3(%arg0: i32) -> (i32, i32) {
    %c0_i32 = arith.constant 0 : i32
    %c0_i32_0 = arith.constant 0 : i32
    %c0_i32_1 = arith.constant 0 : i32
    return %c0_i32, %c0_i32_0 : i32, i32
  }
  func.func @transform_4(%arg0: i32) -> (i32, i32) {
    %c0_i32 = arith.constant 0 : i32
    %c0_i32_0 = arith.constant 0 : i32
    return %arg0, %c0_i32 : i32, i32
  }
}

</mosaic_0001>

<bundles_post_ra>
// kernel: tpu_custom_call.1
= control target key start
LH: loop header
LB: loop body
LE: loop exit
PB: predicated region body
PF: predicated region fallthrough
CT: control target
= control target key end

     0   :  { %9 = vsyncpa [#allocation3], 0  ;;  %s1617_s0 = inlined_call_operand.hbm [shape: f32[8,1024], index: 0, kind: input, shape index: {}]   ;;  %s1618_s1 = inlined_call_operand.hbm [shape: bf16[1024,128], index: 1, kind: input, shape index: {}]   ;;  %s1619_s2 = inlined_call_operand.hbm [shape: bf16[3,128,128], index: 2, kind: input, shape index: {}]   ;;  %s1620_s3 = inlined_call_operand.hbm [shape: f32[4,128], index: 3, kind: input, shape index: {}]   ;;  %s1621_s4 = inlined_call_operand.hbm [shape: f32[8,128], index: 4, kind: output, shape index: {}]  }
   0x1   :  { %10 = vsyncpa [#allocation6], 0 }
   0x2   :  { %11 = vsyncpa [#allocation9], 0  ;;  %s28_s17 = sshll.u32 %s1618_s1, 4  ;;  %s29_s17 = int_to_ptr.hbm [resolvable:$true] %s28_s17 }
   0x3   :  { %12 = vsyncpa [#allocation4], 0  ;;  %s1564_s18 = smov [#allocation5]   ;;  %s18_s22 = sshll.u32 %s1617_s0, 4  ;;  %s19_s22 = int_to_ptr.hbm [resolvable:$true] %s18_s22 }
   0x4   :  { %s30_s19 = sshll.u32 %s1564_s18, 4  ;;  %s1565_s23 = smov 64   ;;  %s31_s19 = int_to_ptr.vmem [resolvable:$true] %s30_s19 }
   0x5   :  { %s1566_s24 = smov 4   ;;  %s1567_s25 = smov [#allocation2]  }
   0x6   :  { %36 = dma.hbm_to_vmem [thread:$0]  %s29_s17, 8192, %s31_s19, [#allocation6], %s1565_s23, %s1565_s23, %s1566_s24  }
   0x7   :  { %s20_s26 = sshll.u32 %s1567_s25, 4  ;;  %s41_s29 = sshll.u32 %s1619_s2, 4  ;;  %s21_s26 = int_to_ptr.vmem [resolvable:$true] %s20_s26  ;;  %s42_s29 = int_to_ptr.hbm [resolvable:$true] %s41_s29 }
   0x8   :  { %23 = dma.hbm_to_vmem [thread:$0]  %s19_s22, 1024, %s21_s26, [#allocation3]  }
   0x9   :  { %s55_s5 = sshll.u32 %s1620_s3, 4  ;;  %s1568_s6 = smov [#allocation7]   ;;  %s56_s5 = int_to_ptr.hbm [resolvable:$true] %s55_s5 }
   0xa   :  { %s43_s7 = sshll.u32 %s1568_s6, 4  ;;  %s1569_s0 = smov [#allocation8]   ;;  %s44_s7 = int_to_ptr.vmem [resolvable:$true] %s43_s7 }
   0xb   :  { %49 = dma.hbm_to_vmem [thread:$0]  %s42_s29, 3072, %s44_s7, [#allocation6], %s1565_s23, %s1565_s23, %s1566_s24  }
   0xc   :  { %s57_s8 = sshll.u32 %s1569_s0, 4  ;;  %s58_s8 = int_to_ptr.vmem [resolvable:$true] %s57_s8 }
   0xd   :  { %60 = dma.hbm_to_vmem [thread:$0]  %s56_s5, 64, %s58_s8, [#allocation9]  }
   0xe   :  { %1556 = dma.done.wait [#allocation3], 1024  }
   0xf   :  { %1557 = vsyncadd [#allocation3], 4294966272 }
  0x10   :  { %1558 = dma.done.wait [#allocation6], 11264  }
  0x11   :  { %1559 = vsyncadd [#allocation6], 4294956032 }
  0x12   :  { %1560 = dma.done.wait [#allocation9], 64  }
  0x13   :  { %1561 = vsyncadd [#allocation9], 4294967232  ;;  %v1344_v0 = vld [vmem:[#allocation5 + $0x38] sm:$0xff]  ;;  %v1343_v4 = vld [vmem:[#allocation5 + $0x30] sm:$0xff]  ;;  %s1570_s2 = smov [#allocation10]   ;;  %s973_s11 = sshll.u32 %s1621_s4, 4  ;;  %s974_s11 = int_to_ptr.hbm [resolvable:$true] %s973_s11 }
  0x14   :  { %v1352_v1 = vld [vmem:[#allocation5 + $0x78] sm:$0xff]  ;;  %607 = vmatpush.bf16.msra.mxu0 %v1344_v0  ;;  %v1351_v5 = vld [vmem:[#allocation5 + $0x70] sm:$0xff]  ;;  %v1342_v8 = vld [vmem:[#allocation5 + $0x28] sm:$0xff]  ;;  %s971_s3 = sshll.u32 %s1570_s2, 4  ;;  %s972_s3 = int_to_ptr.vmem [resolvable:$true] %s971_s3 }
  0x15   :  { %v1360_v2 = vld [vmem:[#allocation5 + $0xb8] sm:$0xff]  ;;  %620 = vmatpush.bf16.msra.mxu1 %v1352_v1  ;;  %v1359_v6 = vld [vmem:[#allocation5 + $0xb0] sm:$0xff]  ;;  %v1350_v9 = vld [vmem:[#allocation5 + $0x68] sm:$0xff] }
  0x16   :  { %v1368_v3 = vld [vmem:[#allocation5 + $0xf8] sm:$0xff]  ;;  %633 = vmatpush.bf16.msra.mxu2 %v1360_v2  ;;  %v1367_v7 = vld [vmem:[#allocation5 + $0xf0] sm:$0xff]  ;;  %v1358_v10 = vld [vmem:[#allocation5 + $0xa8] sm:$0xff] }
  0x17   :  { %646 = vmatpush.bf16.msra.mxu3 %v1368_v3  ;;  %v1366_v11 = vld [vmem:[#allocation5 + $0xe8] sm:$0xff]  ;;  %v1341_v12 = vld [vmem:[#allocation5 + $0x20] sm:$0xff]  ;;  %v1340_v16 = vld [vmem:[#allocation5 + $0x18] sm:$0xff] }
  0x18   :  { %608 = vmatpush.bf16.msra.mxu0 %v1343_v4  ;;  %v1349_v13 = vld [vmem:[#allocation5 + $0x60] sm:$0xff]  ;;  %v1348_v17 = vld [vmem:[#allocation5 + $0x58] sm:$0xff]  ;;  %v1339_v20 = vld [vmem:[#allocation5 + $0x10] sm:$0xff] }
  0x19   :  { %621 = vmatpush.bf16.msra.mxu1 %v1351_v5  ;;  %v1357_v14 = vld [vmem:[#allocation5 + $0xa0] sm:$0xff]  ;;  %v1356_v18 = vld [vmem:[#allocation5 + $0x98] sm:$0xff]  ;;  %v1347_v21 = vld [vmem:[#allocation5 + $0x50] sm:$0xff] }
  0x1a   :  { %634 = vmatpush.bf16.msra.mxu2 %v1359_v6  ;;  %v1365_v15 = vld [vmem:[#allocation5 + $0xe0] sm:$0xff]  ;;  %v1364_v19 = vld [vmem:[#allocation5 + $0xd8] sm:$0xff]  ;;  %v1355_v22 = vld [vmem:[#allocation5 + $0x90] sm:$0xff] }
  0x1b   :  { %647 = vmatpush.bf16.msra.mxu3 %v1367_v7  ;;  %v1363_v23 = vld [vmem:[#allocation5 + $0xd0] sm:$0xff]  ;;  %v1338_v24 = vld [vmem:[#allocation5 + $0x8] sm:$0xff]  ;;  %v1337_v28 = vld [vmem:[#allocation5] sm:$0xff] }
  0x1c   :  { %609 = vmatpush.bf16.msra.mxu0 %v1342_v8  ;;  %v1346_v25 = vld [vmem:[#allocation5 + $0x48] sm:$0xff]  ;;  %v1345_v29 = vld [vmem:[#allocation5 + $0x40] sm:$0xff]  ;;  %v1376_v32 = vld [vmem:[#allocation5 + $0x138] sm:$0xff] }
  0x1d   :  { %622 = vmatpush.bf16.msra.mxu1 %v1350_v9  ;;  %v1354_v26 = vld [vmem:[#allocation5 + $0x88] sm:$0xff]  ;;  %v1353_v30 = vld [vmem:[#allocation5 + $0x80] sm:$0xff]  ;;  %v80_v33 = vld [vmem:[#allocation2 + $0x10] sm:$0xff] }
  0x1e   :  { %635 = vmatpush.bf16.msra.mxu2 %v1358_v10  ;;  %v1362_v27 = vld [vmem:[#allocation5 + $0xc8] sm:$0xff]  ;;  %v1361_v31 = vld [vmem:[#allocation5 + $0xc0] sm:$0xff]  ;;  %v1384_v35 = vld [vmem:[#allocation5 + $0x178] sm:$0xff]  ;;  %v88_v40 = vpack.c.bf16 %v80_v33, %v80_v33 }
  0x1f   :  { %648 = vmatpush.bf16.msra.mxu3 %v1366_v11  ;;  %v78_v34 = vld [vmem:[#allocation2] sm:$0xff]  ;;  %v81_v36 = vld [vmem:[#allocation2 + $0x18] sm:$0xff]  ;;  %v79_v37 = vld [vmem:[#allocation2 + $0x8] sm:$0xff] }
  0x20   :  { %610 = vmatpush.bf16.msra.mxu0 %v1341_v12  ;;  %v1392_v38 = vld [vmem:[#allocation5 + $0x1b8] sm:$0xff]  ;;  %v86_v41 = vpack.c.bf16 %v78_v34, %v78_v34  ;;  %v89_v42 = vpack.c.bf16 %v81_v36, %v81_v36  ;;  %v87_v43 = vpack.c.bf16 %v79_v37, %v79_v37  ;;  %v1375_v44 = vld [vmem:[#allocation5 + $0x130] sm:$0xff]  ;;  %v1374_v48 = vld [vmem:[#allocation5 + $0x128] sm:$0xff] }
  0x21   :  { %623 = vmatpush.bf16.msra.mxu1 %v1349_v13  ;;  %v1400_v39 = vld [vmem:[#allocation5 + $0x1f8] sm:$0xff]  ;;  %v1383_v45 = vld [vmem:[#allocation5 + $0x170] sm:$0xff]  ;;  %v1382_v49 = vld [vmem:[#allocation5 + $0x168] sm:$0xff] }
  0x22   :  { %636 = vmatpush.bf16.msra.mxu2 %v1357_v14  ;;  %v1391_v46 = vld [vmem:[#allocation5 + $0x1b0] sm:$0xff]  ;;  %v1390_v50 = vld [vmem:[#allocation5 + $0x1a8] sm:$0xff]  ;;  %v1373_v52 = vld [vmem:[#allocation5 + $0x120] sm:$0xff] }
  0x23   :  { %649 = vmatpush.bf16.msra.mxu3 %v1365_v15  ;;  %v1399_v47 = vld [vmem:[#allocation5 + $0x1f0] sm:$0xff]  ;;  %v1398_v51 = vld [vmem:[#allocation5 + $0x1e8] sm:$0xff]  ;;  %v1381_v53 = vld [vmem:[#allocation5 + $0x160] sm:$0xff] }
  0x24   :  { %611 = vmatpush.bf16.msra.mxu0 %v1340_v16  ;;  %v1389_v54 = vld [vmem:[#allocation5 + $0x1a0] sm:$0xff]  ;;  %v1372_v56 = vld [vmem:[#allocation5 + $0x118] sm:$0xff]  ;;  %v1371_v60 = vld [vmem:[#allocation5 + $0x110] sm:$0xff] }
  0x25   :  { %624 = vmatpush.bf16.msra.mxu1 %v1348_v17  ;;  %v1397_v55 = vld [vmem:[#allocation5 + $0x1e0] sm:$0xff]  ;;  %v1380_v57 = vld [vmem:[#allocation5 + $0x158] sm:$0xff]  ;;  %v1379_v61 = vld [vmem:[#allocation5 + $0x150] sm:$0xff] }
  0x26   :  { %637 = vmatpush.bf16.msra.mxu2 %v1356_v18  ;;  %v1388_v58 = vld [vmem:[#allocation5 + $0x198] sm:$0xff]  ;;  %v1387_v62 = vld [vmem:[#allocation5 + $0x190] sm:$0xff]  ;;  %v1370_v0 = vld [vmem:[#allocation5 + $0x108] sm:$0xff] }
  0x27   :  { %650 = vmatpush.bf16.msra.mxu3 %v1364_v19  ;;  %v1396_v59 = vld [vmem:[#allocation5 + $0x1d8] sm:$0xff]  ;;  %v1395_v63 = vld [vmem:[#allocation5 + $0x1d0] sm:$0xff]  ;;  %v1378_v1 = vld [vmem:[#allocation5 + $0x148] sm:$0xff] }
  0x28   :  { %612 = vmatpush.bf16.msra.mxu0 %v1339_v20  ;;  %v1386_v2 = vld [vmem:[#allocation5 + $0x188] sm:$0xff]  ;;  %v1369_v4 = vld [vmem:[#allocation5 + $0x100] sm:$0xff]  ;;  %v84_v10 = vld [vmem:[#allocation2 + $0x30] sm:$0xff] }
  0x29   :  { %625 = vmatpush.bf16.msra.mxu1 %v1347_v21  ;;  %v1394_v3 = vld [vmem:[#allocation5 + $0x1c8] sm:$0xff]  ;;  %v1377_v5 = vld [vmem:[#allocation5 + $0x140] sm:$0xff]  ;;  %v85_v11 = vld [vmem:[#allocation2 + $0x38] sm:$0xff]  ;;  %v92_v14 = vpack.c.bf16 %v84_v10, %v84_v10 }
  0x2a   :  { %638 = vmatpush.bf16.msra.mxu2 %v1355_v22  ;;  %v1385_v6 = vld [vmem:[#allocation5 + $0x180] sm:$0xff]  ;;  %v83_v8 = vld [vmem:[#allocation2 + $0x28] sm:$0xff]  ;;  %v93_v15 = vpack.c.bf16 %v85_v11, %v85_v11  ;;  %v1408_v16 = vld [vmem:[#allocation7 + $0x38] sm:$0xff] }
  0x2b   :  { %651 = vmatpush.bf16.msra.mxu3 %v1363_v23  ;;  %v82_v7 = vld [vmem:[#allocation2 + $0x20] sm:$0xff]  ;;  %v91_v13 = vpack.c.bf16 %v83_v8, %v83_v8  ;;  %v1407_v17 = vld [vmem:[#allocation7 + $0x30] sm:$0xff]  ;;  %v1406_v18 = vld [vmem:[#allocation7 + $0x28] sm:$0xff] }
  0x2c   :  { %613 = vmatpush.bf16.msra.mxu0 %v1338_v24  ;;  %v1393_v9 = vld [vmem:[#allocation5 + $0x1c0] sm:$0xff]  ;;  %v90_v12 = vpack.c.bf16 %v82_v7, %v82_v7  ;;  %v1404_v20 = vld [vmem:[#allocation7 + $0x18] sm:$0xff]  ;;  %v1403_v22 = vld [vmem:[#allocation7 + $0x10] sm:$0xff] }
  0x2d   :  { %626 = vmatpush.bf16.msra.mxu1 %v1346_v25  ;;  %v1405_v19 = vld [vmem:[#allocation7 + $0x20] sm:$0xff]  ;;  %v1402_v24 = vld [vmem:[#allocation7 + $0x8] sm:$0xff] }
  0x2e   :  { %639 = vmatpush.bf16.msra.mxu2 %v1354_v26  ;;  %v1414_v37 = vld [vmem:[#allocation7 + $0x68] sm:$0xff] }
  0x2f   :  { %652 = vmatpush.bf16.msra.mxu3 %v1362_v27  ;;  %v1418_v8 = vld [vmem:[#allocation7 + $0x88] sm:$0xff] }
  0x30   :  { %614 = vmatpush.bf16.msra.mxu0 %v1337_v28  ;;  %v1401_v28 = vld [vmem:[#allocation7] sm:$0xff] }
  0x31   :  { %627 = vmatpush.bf16.msra.mxu1 %v1345_v29 }
  0x32   :  { %640 = vmatpush.bf16.msra.mxu2 %v1353_v30  ;;  %v1608_v30 = vld [vmem:[#allocation8] sm:$0xf] }
  0x33   :  { %653 = vmatpush.bf16.msra.mxu3 %v1361_v31  ;;  %615 = vmatmul.bf16.vlgmr.msra.gmra.mxu0 %v86_v41  ;;  %v222_v31 = vperm.slane %v1608_v30, 0  ;;  %v1412_v41 = vld [vmem:[#allocation7 + $0x58] sm:$0xff]  ;;  %v810_v10 = vperm.slane %v1608_v30, 2 }
  0x34   :  { %659 = vmatpush.bf16.msrb.mxu0 %v1376_v32  ;;  %628 = vmatmul.bf16.vlgmr.msra.gmra.mxu1 %v87_v43  ;;  %v1416_v32 = vld [vmem:[#allocation7 + $0x78] sm:$0xff] }
  0x35   :  { %672 = vmatpush.bf16.msrb.mxu1 %v1384_v35  ;;  %641 = vmatmul.bf16.vlgmr.msra.gmra.mxu2 %v88_v40  ;;  %v1415_v35 = vld [vmem:[#allocation7 + $0x70] sm:$0xff] }
  0x36   :  { %685 = vmatpush.bf16.msrb.mxu2 %v1392_v38  ;;  %654 = vmatmul.bf16.vlgmr.msra.gmra.mxu3 %v89_v42 }
  0x37   :  { %698 = vmatpush.bf16.msrb.mxu3 %v1400_v39  ;;  %v1413_v39 = vld [vmem:[#allocation7 + $0x60] sm:$0xff] }
  0x38   :  { %660 = vmatpush.bf16.msrb.mxu0 %v1375_v44 }
  0x39   :  { %673 = vmatpush.bf16.msrb.mxu1 %v1383_v45 }
  0x3a   :  { %686 = vmatpush.bf16.msrb.mxu2 %v1391_v46  ;;  %v1411_v46 = vld [vmem:[#allocation7 + $0x50] sm:$0xff] }
  0x3b   :  { %699 = vmatpush.bf16.msrb.mxu3 %v1399_v47 }
  0x3c   :  { %661 = vmatpush.bf16.msrb.mxu0 %v1374_v48 }
  0x3d   :  { %674 = vmatpush.bf16.msrb.mxu1 %v1382_v49 }
  0x3e   :  { %687 = vmatpush.bf16.msrb.mxu2 %v1390_v50 }
  0x3f   :  { %700 = vmatpush.bf16.msrb.mxu3 %v1398_v51 }
  0x40   :  { %662 = vmatpush.bf16.msrb.mxu0 %v1373_v52 }
  0x41   :  { %675 = vmatpush.bf16.msrb.mxu1 %v1381_v53 }
  0x42   :  { %688 = vmatpush.bf16.msrb.mxu2 %v1389_v54 }
  0x43   :  { %701 = vmatpush.bf16.msrb.mxu3 %v1397_v55 }
  0x44   :  { %663 = vmatpush.bf16.msrb.mxu0 %v1372_v56 }
  0x45   :  { %676 = vmatpush.bf16.msrb.mxu1 %v1380_v57 }
  0x46   :  { %689 = vmatpush.bf16.msrb.mxu2 %v1388_v58  ;;  %v1410_v58 = vld [vmem:[#allocation7 + $0x48] sm:$0xff] }
  0x47   :  { %702 = vmatpush.bf16.msrb.mxu3 %v1396_v59  ;;  %v1409_v59 = vld [vmem:[#allocation7 + $0x40] sm:$0xff] }
  0x48   :  { %664 = vmatpush.bf16.msrb.mxu0 %v1371_v60  ;;  %v1424_v60 = vld [vmem:[#allocation7 + $0xb8] sm:$0xff] }
  0x49   :  { %677 = vmatpush.bf16.msrb.mxu1 %v1379_v61  ;;  %v1423_v61 = vld [vmem:[#allocation7 + $0xb0] sm:$0xff] }
  0x4a   :  { %690 = vmatpush.bf16.msrb.mxu2 %v1387_v62  ;;  %v1422_v62 = vld [vmem:[#allocation7 + $0xa8] sm:$0xff] }
  0x4b   :  { %703 = vmatpush.bf16.msrb.mxu3 %v1395_v63  ;;  %v1421_v63 = vld [vmem:[#allocation7 + $0xa0] sm:$0xff] }
  0x4c   :  { %665 = vmatpush.bf16.msrb.mxu0 %v1370_v0  ;;  %v1420_v0 = vld [vmem:[#allocation7 + $0x98] sm:$0xff] }
  0x4d   :  { %678 = vmatpush.bf16.msrb.mxu1 %v1378_v1  ;;  %v1419_v1 = vld [vmem:[#allocation7 + $0x90] sm:$0xff] }
  0x4e   :  { %691 = vmatpush.bf16.msrb.mxu2 %v1386_v2  ;;  %v729_v2 = vperm.slane %v1608_v30, 1 }
  0x4f   :  { %704 = vmatpush.bf16.msrb.mxu3 %v1394_v3 }
  0x50   :  { %666 = vmatpush.bf16.msrb.mxu0 %v1369_v4 }
  0x51   :  { %679 = vmatpush.bf16.msrb.mxu1 %v1377_v5 }
  0x52   :  { %692 = vmatpush.bf16.msrb.mxu2 %v1385_v6 }
  0x53   :  { %705 = vmatpush.bf16.msrb.mxu3 %v1393_v9  ;;  %667 = vmatmul.bf16.vlgmr.msrb.gmra.mxu0 %v90_v12  ;;  %v1417_v9 = vld [vmem:[#allocation7 + $0x80] sm:$0xff] }
  0x54   :  { %680 = vmatmul.bf16.vlgmr.msrb.gmra.mxu1 %v91_v13  ;;  %778 = vmatpush.bf16.msra.mxu0 %v1408_v16  ;;  %v891_v16 = vperm.slane %v1608_v30, 3 }
  0x55   :  { %693 = vmatmul.bf16.vlgmr.msrb.gmra.mxu2 %v92_v14  ;;  %859 = vmatpush.bf16.msra.mxu1 %v1416_v32 }
  0x56   :  { %706 = vmatmul.bf16.vlgmr.msrb.gmra.mxu3 %v93_v15  ;;  %940 = vmatpush.bf16.msra.mxu2 %v1424_v60 }
  0x58   :  { %779 = vmatpush.bf16.msra.mxu0 %v1407_v17 }
  0x59   :  { %860 = vmatpush.bf16.msra.mxu1 %v1415_v35 }
  0x5a   :  { %941 = vmatpush.bf16.msra.mxu2 %v1423_v61 }
  0x5c   :  { %780 = vmatpush.bf16.msra.mxu0 %v1406_v18 }
  0x5d   :  { %861 = vmatpush.bf16.msra.mxu1 %v1414_v37 }
  0x5e   :  { %942 = vmatpush.bf16.msra.mxu2 %v1422_v62 }
  0x60   :  { %781 = vmatpush.bf16.msra.mxu0 %v1405_v19 }
  0x61   :  { %862 = vmatpush.bf16.msra.mxu1 %v1413_v39 }
  0x62   :  { %943 = vmatpush.bf16.msra.mxu2 %v1421_v63 }
  0x64   :  { %782 = vmatpush.bf16.msra.mxu0 %v1404_v20 }
  0x65   :  { %863 = vmatpush.bf16.msra.mxu1 %v1412_v41 }
  0x66   :  { %944 = vmatpush.bf16.msra.mxu2 %v1420_v0 }
  0x68   :  { %783 = vmatpush.bf16.msra.mxu0 %v1403_v22 }
  0x69   :  { %864 = vmatpush.bf16.msra.mxu1 %v1411_v46 }
  0x6a   :  { %945 = vmatpush.bf16.msra.mxu2 %v1419_v1 }
  0x6c   :  { %784 = vmatpush.bf16.msra.mxu0 %v1402_v24 }
  0x6d   :  { %865 = vmatpush.bf16.msra.mxu1 %v1410_v58 }
  0x6e   :  { %946 = vmatpush.bf16.msra.mxu2 %v1418_v8 }
  0x70   :  { %785 = vmatpush.bf16.msra.mxu0 %v1401_v28 }
  0x71   :  { %866 = vmatpush.bf16.msra.mxu1 %v1409_v59 }
  0x72   :  { %947 = vmatpush.bf16.msra.mxu2 %v1417_v9 }
  0xb0   :  { %v616_v21 = vpop.f32.mrf.mxu0 }
  0xb1   :  { %v629_v23 = vpop.f32.mrf.mxu1  ;;  %v617_v36 = vadd.f32 %v616_v21, %v222_v31 }
  0xb3   :  { %v630_v38 = vadd.f32 %v629_v23, %v617_v36 }
  0xb8   :  { %v642_v25 = vpop.f32.mrf.mxu2  ;;  %v618_v27 = vpop.f32.mrf.mxu0 }
  0xb9   :  { %v655_v26 = vpop.f32.mrf.mxu3  ;;  %v631_v29 = vpop.f32.mrf.mxu1  ;;  %v643_v40 = vadd.f32 %v642_v25, %v630_v38 }
  0xbb   :  { %v656_v42 = vadd.f32 %v655_v26, %v643_v40 }
  0xc0   :  { %v644_v33 = vpop.f32.mrf.mxu2 }
  0xc1   :  { %v657_v34 = vpop.f32.mrf.mxu3 }
  0xd0   :  { %v668_v43 = vpop.f32.mrf.mxu0 }
  0xd1   :  { %v681_v44 = vpop.f32.mrf.mxu1  ;;  %v669_v45 = vadd.f32 %v668_v43, %v656_v42 }
  0xd3   :  { %v682_v47 = vadd.f32 %v681_v44, %v669_v45 }
  0xd8   :  { %v694_v48 = vpop.f32.mrf.mxu2  ;;  %v670_v51 = vpop.f32.mrf.mxu0 }
  0xd9   :  { %v707_v49 = vpop.f32.mrf.mxu3  ;;  %v695_v50 = vadd.f32 %v694_v48, %v682_v47  ;;  %v683_v52 = vpop.f32.mrf.mxu1 }
  0xdb   :  { %v708_v53 = vadd.f32 %v707_v49, %v695_v50 }
  0xdd   :  { %v711_v54 = vmax.f32 %v708_v53, 0.0 }
  0xdf   :  { %v712_v55 = vpack.c.bf16 %v711_v54, %v711_v54 }
  0xe0   :  { %v696_v56 = vpop.f32.mrf.mxu2 }
  0xe1   :  { %v709_v57 = vpop.f32.mrf.mxu3  ;;  %786 = vmatmul.bf16.vlgmr.msra.gmra.mxu0 %v712_v55 }
 0x15e   :  { %v787_v3 = vpop.f32.mrf.mxu0 }
 0x15f   :  { %v788_v4 = vadd.f32 %v787_v3, %v729_v2 }
 0x161   :  { %v791_v5 = vmax.f32 %v788_v4, 0.0 }
 0x163   :  { %v792_v6 = vpack.c.bf16 %v791_v5, %v791_v5 }
 0x165   :  { %867 = vmatmul.bf16.vlgmr.msra.gmra.mxu1 %v792_v6 }
 0x166   :  { %v789_v7 = vpop.f32.mrf.mxu0 }
 0x1e2   :  { %v868_v11 = vpop.f32.mrf.mxu1 }
 0x1e3   :  { %v869_v12 = vadd.f32 %v868_v11, %v810_v10 }
 0x1e5   :  { %v872_v13 = vmax.f32 %v869_v12, 0.0 }
 0x1e7   :  { %v873_v14 = vpack.c.bf16 %v872_v13, %v872_v13 }
 0x1e9   :  { %948 = vmatmul.bf16.vlgmr.msra.gmra.mxu2 %v873_v14 }
 0x1ea   :  { %v870_v15 = vpop.f32.mrf.mxu1 }
 0x26c   :  { %v949_v17 = vpop.f32.mrf.mxu2 }
 0x26d   :  { %v950_v18 = vadd.f32 %v949_v17, %v891_v16 }
 0x26f   :  { %953 = vmax.xlane.f32.xlu0 %v950_v18 }
 0x274   :  { %v951_v19 = vpop.f32.mrf.mxu2 }
 0x2e2   :  { %v954_v20 = vpop.xlane.xlu0 %953 }
 0x2e3   :  { %v955_v21 = vsub.f32 %v950_v18, %v954_v20 }
 0x2e5   :  { %v956_v22 = vmul.f32 1.442695, %v955_v21 }
 0x2e7   :  { %1432 = vpow2.f32 %v956_v22 }
 0x2ed   :  { %v1433_v23 = vpop.eup %1432 }
 0x2ee   :  { %958 = vadd.xlane.f32.xlu0 %v1433_v23 }
 0x361   :  { %v959_v24 = vpop.xlane.xlu0 %958 }
 0x362   :  { %1434 = vrcp.f32 %v959_v24 }
 0x368   :  { %v1435_v25 = vpop.eup %1434 }
 0x369   :  { %v961_v26 = vmul.f32 %v1435_v25, %v959_v24 }
 0x36b   :  { %v962_v27 = vsub.f32 2.0, %v961_v26 }
 0x36d   :  { %v963_v28 = vmul.f32 %v1435_v25, %v962_v27 }
 0x36f   :  { %v964_v29 = vmul.f32 %v1433_v23, %v963_v28 }
 0x371   :  { %965 = vst [vmem:[#allocation10] sm:$0xff] %v964_v29 }
 0x372   :  { %976 = dma.vmem_to_hbm [thread:$0]  %s972_s3, 128, %s974_s11, [#allocation4]  }
 0x373   :  { %1562 = dma.done.wait [#allocation4], 128  }
 0x374   :  { %1563 = vsyncadd [#allocation4], 4294967168 }
 0x375   :  { %981 = vsyncpa [#allocation3], 1 }
 0x376   :  { %982 = vsyncpa [#allocation6], 1 }
 0x377   :  { %983 = vsyncpa [#allocation9], 1 }
 0x378   :  { %984 = vsyncpa [#allocation4], 1 }

</bundles_post_ra>
